<compile_context>
chip_gen: v6e
topology: v6e:2x2x1
jax: 0.10.0
libtpu: 0.0.40
codegen_flags: <defaults>
</compile_context>

<pallas_src>
import jax
import jax.numpy as jnp
from jax.experimental import pallas as pl
from jax.experimental.pallas import tpu as pltpu


def _round_up(n: int, m: int) -> int:
    return ((n + m - 1) // m) * m


def node_classifier_kernel(x_ref, w1_ref, b1_ref, w2_ref, b2_ref, w3_ref, b3_ref, o_ref):
    # Operand cast (if any) happens here, hidden under the tile DMA.
    x = x_ref[...].astype(w1_ref.dtype)
    # mlp1 + tanh (MXU matmul, f32 accumulate; bias/tanh in f32)
    h1 = jnp.dot(x, w1_ref[...], preferred_element_type=jnp.float32)
    h1 = jnp.tanh(h1 + b1_ref[...])
    # mlp2 + tanh
    h2 = jnp.dot(h1.astype(w2_ref.dtype), w2_ref[...],
                 preferred_element_type=jnp.float32)
    h2 = jnp.tanh(h2 + b2_ref[...])
    # mlp3 (3-class logits, no activation) — narrow masked store is cheap,
    # and the HBM writeback of a (tile_b, 3) block is contiguous.
    out = jnp.dot(h2.astype(w3_ref.dtype), w3_ref[...],
                  preferred_element_type=jnp.float32)
    o_ref[...] = (out + b3_ref[...]).astype(o_ref.dtype)


def node_classifier(x, w1, b1, w2, b2, w3, b3, *,
                    max_tile_b: int = 8192, compute_dtype=None, out_dtype=None):
    """Forward pass identical to the PyTorch NodeClassifier.

    Weights are stored as (in_features, out_features) (PyTorch W.T), biases as
    (1, out). `compute_dtype=jnp.bfloat16` casts the MXU operands only (x is
    cast in-kernel, weights in the wrapper); accumulation, bias-add and tanh
    always run in float32.
    """
    B, latent = x.shape
    h2x = w1.shape[1]          # hidden_size * 2
    hid = w2.shape[1]          # hidden_size
    n_cls = w3.shape[1]        # 3
    out_dtype = x.dtype if out_dtype is None else out_dtype

    # Weight operand casts only (tiny constants); x is cast inside the kernel.
    if compute_dtype is not None:
        w1c = w1.astype(compute_dtype)
        w2c = w2.astype(compute_dtype)
        w3c = w3.astype(compute_dtype)
    else:
        w1c, w2c, w3c = w1, w2, w3

    # --- adaptive batch tiling (no wrapper pad; ragged last block is masked) ---
    if B <= 512:
        tile_b = _round_up(B, 8)                 # tiny batch: single block
    else:
        # At least 2 (even) grid steps so v7x's two TensorCores stay balanced,
        # while keeping tiles as large as possible (per-step overhead ~0.35us).
        n_steps = max(2, pl.cdiv(B, max_tile_b))
        if n_steps % 2:
            n_steps += 1
        tile_b = _round_up(pl.cdiv(B, n_steps), 8)
    grid = (pl.cdiv(B, tile_b),)

    out = pl.pallas_call(
        node_classifier_kernel,
        out_shape=jax.ShapeDtypeStruct((B, n_cls), out_dtype),
        grid_spec=pltpu.PrefetchScalarGridSpec(
            num_scalar_prefetch=0,
            grid=grid,
            in_specs=[
                pl.BlockSpec((tile_b, latent), lambda i: (i, 0)),
                pl.BlockSpec((latent, h2x),    lambda i: (0, 0)),
                pl.BlockSpec((1, h2x),         lambda i: (0, 0)),
                pl.BlockSpec((h2x, hid),       lambda i: (0, 0)),
                pl.BlockSpec((1, hid),         lambda i: (0, 0)),
                pl.BlockSpec((hid, n_cls),     lambda i: (0, 0)),
                pl.BlockSpec((1, n_cls),       lambda i: (0, 0)),
            ],
            out_specs=pl.BlockSpec((tile_b, n_cls), lambda i: (i, 0)),
        ),
        compiler_params=pltpu.CompilerParams(
            dimension_semantics=("parallel",),
            # Footprint at tile_b=8192, latent=hid=32: ~6 MiB incl. double
            # buffers — comfortably inside scoped VMEM on v5e/v6e/v7x.
            vmem_limit_bytes=32 * 1024 * 1024,
        ),
    )(x, w1c, b1, w2c, b2, w3c, b3)
    return out


def init_params(key, latent_size, hidden_size):
    """Deterministic init mimicking nn.Linear (weights stored transposed)."""
    ks = jax.random.split(key, 6)

    def linear(kw, kb, fan_in, fan_out):
        bound = 1.0 / jnp.sqrt(fan_in)
        w = jax.random.uniform(kw, (fan_in, fan_out), jnp.float32, -bound, bound)
        b = jax.random.uniform(kb, (1, fan_out), jnp.float32, -bound, bound)
        return w, b

    w1, b1 = linear(ks[0], ks[1], latent_size, hidden_size * 2)
    w2, b2 = linear(ks[2], ks[3], hidden_size * 2, hidden_size)
    w3, b3 = linear(ks[4], ks[5], hidden_size, 3)
    return w1, b1, w2, b2, w3, b3


def node_classifier_ref(x, w1, b1, w2, b2, w3, b3):
    h = jnp.tanh(x @ w1 + b1)
    h = jnp.tanh(h @ w2 + b2)
    return h @ w3 + b3


if __name__ == "__main__":
    latent_size = 32
    hidden_size = 32

    key = jax.random.PRNGKey(0)
    k_x, k_p, k_x2 = jax.random.split(key, 3)
    params = init_params(k_p, latent_size, hidden_size)

    # --- small batch: single-block path, exact f32 match vs reference ---
    batch = 16
    x = jax.random.normal(k_x, (batch, latent_size), dtype=jnp.float32)
    ref = node_classifier_ref(x, *params)
    out = jax.block_until_ready(node_classifier(x, *params))
    assert out.shape == (batch, 3)
    assert jnp.allclose(out, ref, atol=1e-5, rtol=1e-5), "f32 mismatch vs reference"

    # --- larger ragged batch: multi-step cdiv grid, masked last block ---
    batch2 = 600
    x2 = jax.random.normal(k_x2, (batch2, latent_size), dtype=jnp.float32)
    ref2 = node_classifier_ref(x2, *params)
    out2 = jax.block_until_ready(node_classifier(x2, *params))
    assert out2.shape == (batch2, 3)
    assert jnp.allclose(out2, ref2, atol=1e-5, rtol=1e-5), "ragged-grid mismatch vs reference"

    # --- bf16-operand fast path (in-kernel x cast); looser tolerance ---
    out_bf16 = jax.block_until_ready(
        node_classifier(x, *params, compute_dtype=jnp.bfloat16))
    assert out_bf16.shape == (batch, 3)
    assert jnp.allclose(out_bf16, ref, atol=5e-2, rtol=5e-2), "bf16 mismatch vs reference"

    print("KERNEL_OK")
</pallas_src>

<mosaic_0001>
module attributes {stable_mosaic.version = 11 : i64} {
  func.func @node_classifier_kernel(%arg0: i32, %arg1: memref<16x32xf32, #tpu.memory_space<vmem>>, %arg2: memref<32x64xf32, #tpu.memory_space<vmem>>, %arg3: memref<1x64xf32, #tpu.memory_space<vmem>>, %arg4: memref<64x32xf32, #tpu.memory_space<vmem>>, %arg5: memref<1x32xf32, #tpu.memory_space<vmem>>, %arg6: memref<32x3xf32, #tpu.memory_space<vmem>>, %arg7: memref<1x3xf32, #tpu.memory_space<vmem>>, %arg8: memref<16x3xf32, #tpu.memory_space<vmem>>) attributes {dimension_semantics = [#tpu.dimension_semantics<parallel>], iteration_bounds = array<i64: 1>, scalar_prefetch = 0 : i64, scratch_operands = 0 : i64, tpu.core_type = #tpu.core_type<tc>, window_params = [{transform_indices = @transform_0, window_bounds = array<i64: 16, 32>}, {pipeline_mode = #tpu.pipeline_mode<synchronous>, transform_indices = @transform_1, window_bounds = array<i64: 32, 64>}, {pipeline_mode = #tpu.pipeline_mode<synchronous>, transform_indices = @transform_2, window_bounds = array<i64: 1, 64>}, {pipeline_mode = #tpu.pipeline_mode<synchronous>, transform_indices = @transform_3, window_bounds = array<i64: 64, 32>}, {pipeline_mode = #tpu.pipeline_mode<synchronous>, transform_indices = @transform_4, window_bounds = array<i64: 1, 32>}, {pipeline_mode = #tpu.pipeline_mode<synchronous>, transform_indices = @transform_5, window_bounds = array<i64: 32, 3>}, {pipeline_mode = #tpu.pipeline_mode<synchronous>, transform_indices = @transform_6, window_bounds = array<i64: 1, 3>}, {transform_indices = @transform_7, window_bounds = array<i64: 16, 3>}]} {
    %c0 = arith.constant 0 : index
    %c0_0 = arith.constant 0 : index
    %0 = vector.load %arg1[%c0, %c0_0] : memref<16x32xf32, #tpu.memory_space<vmem>>, vector<16x32xf32>
    %c0_1 = arith.constant 0 : index
    %c0_2 = arith.constant 0 : index
    %1 = vector.load %arg2[%c0_1, %c0_2] : memref<32x64xf32, #tpu.memory_space<vmem>>, vector<32x64xf32>
    %cst = arith.constant dense<0.000000e+00> : vector<16x64xf32>
    %2 = tpu.matmul %0, %1, %cst {dimension_numbers = #tpu.dot_dimension_numbers<[1], [0], [0], [1], [0, 0, 1, 1], [], []>} : vector<16x32xf32>, vector<32x64xf32>, vector<16x64xf32> -> vector<16x64xf32>
    %c0_3 = arith.constant 0 : index
    %c0_4 = arith.constant 0 : index
    %3 = vector.load %arg3[%c0_3, %c0_4] : memref<1x64xf32, #tpu.memory_space<vmem>>, vector<1x64xf32>
    %4 = vector.broadcast %3 : vector<1x64xf32> to vector<16x64xf32>
    %5 = arith.addf %2, %4 : vector<16x64xf32>
    %6 = math.tanh %5 : vector<16x64xf32>
    %c0_5 = arith.constant 0 : index
    %c0_6 = arith.constant 0 : index
    %7 = vector.load %arg4[%c0_5, %c0_6] : memref<64x32xf32, #tpu.memory_space<vmem>>, vector<64x32xf32>
    %cst_7 = arith.constant dense<0.000000e+00> : vector<16x32xf32>
    %8 = tpu.matmul %6, %7, %cst_7 {dimension_numbers = #tpu.dot_dimension_numbers<[1], [0], [0], [1], [0, 0, 1, 1], [], []>} : vector<16x64xf32>, vector<64x32xf32>, vector<16x32xf32> -> vector<16x32xf32>
    %c0_8 = arith.constant 0 : index
    %c0_9 = arith.constant 0 : index
    %9 = vector.load %arg5[%c0_8, %c0_9] : memref<1x32xf32, #tpu.memory_space<vmem>>, vector<1x32xf32>
    %10 = vector.broadcast %9 : vector<1x32xf32> to vector<16x32xf32>
    %11 = arith.addf %8, %10 : vector<16x32xf32>
    %12 = math.tanh %11 : vector<16x32xf32>
    %c0_10 = arith.constant 0 : index
    %c0_11 = arith.constant 0 : index
    %13 = vector.load %arg6[%c0_10, %c0_11] : memref<32x3xf32, #tpu.memory_space<vmem>>, vector<32x3xf32>
    %cst_12 = arith.constant dense<0.000000e+00> : vector<16x3xf32>
    %14 = tpu.matmul %12, %13, %cst_12 {dimension_numbers = #tpu.dot_dimension_numbers<[1], [0], [0], [1], [0, 0, 1, 1], [], []>} : vector<16x32xf32>, vector<32x3xf32>, vector<16x3xf32> -> vector<16x3xf32>
    %c0_13 = arith.constant 0 : index
    %c0_14 = arith.constant 0 : index
    %15 = vector.load %arg7[%c0_13, %c0_14] : memref<1x3xf32, #tpu.memory_space<vmem>>, vector<1x3xf32>
    %16 = vector.broadcast %15 : vector<1x3xf32> to vector<16x3xf32>
    %17 = arith.addf %14, %16 : vector<16x3xf32>
    %c0_15 = arith.constant 0 : index
    %c0_16 = arith.constant 0 : index
    %18 = vector.load %arg8[%c0_15, %c0_16] : memref<16x3xf32, #tpu.memory_space<vmem>>, vector<16x3xf32>
    tpu.vector_store %arg8[%c0_15, %c0_16], %17 {strides = array<i32>} : memref<16x3xf32, #tpu.memory_space<vmem>>, vector<16x3xf32>,
    return
  }
  func.func @transform_0(%arg0: i32) -> (i32, i32) {
    %c0_i32 = arith.constant 0 : i32
    %c0_i32_0 = arith.constant 0 : i32
    return %arg0, %c0_i32 : i32, i32
  }
  func.func @transform_1(%arg0: i32) -> (i32, i32) {
    %c0_i32 = arith.constant 0 : i32
    %c0_i32_0 = arith.constant 0 : i32
    %c0_i32_1 = arith.constant 0 : i32
    return %c0_i32, %c0_i32_0 : i32, i32
  }
  func.func @transform_2(%arg0: i32) -> (i32, i32) {
    %c0_i32 = arith.constant 0 : i32
    %c0_i32_0 = arith.constant 0 : i32
    %c0_i32_1 = arith.constant 0 : i32
    return %c0_i32, %c0_i32_0 : i32, i32
  }
  func.func @transform_3(%arg0: i32) -> (i32, i32) {
    %c0_i32 = arith.constant 0 : i32
    %c0_i32_0 = arith.constant 0 : i32
    %c0_i32_1 = arith.constant 0 : i32
    return %c0_i32, %c0_i32_0 : i32, i32
  }
  func.func @transform_4(%arg0: i32) -> (i32, i32) {
    %c0_i32 = arith.constant 0 : i32
    %c0_i32_0 = arith.constant 0 : i32
    %c0_i32_1 = arith.constant 0 : i32
    return %c0_i32, %c0_i32_0 : i32, i32
  }
  func.func @transform_5(%arg0: i32) -> (i32, i32) {
    %c0_i32 = arith.constant 0 : i32
    %c0_i32_0 = arith.constant 0 : i32
    %c0_i32_1 = arith.constant 0 : i32
    return %c0_i32, %c0_i32_0 : i32, i32
  }
  func.func @transform_6(%arg0: i32) -> (i32, i32) {
    %c0_i32 = arith.constant 0 : i32
    %c0_i32_0 = arith.constant 0 : i32
    %c0_i32_1 = arith.constant 0 : i32
    return %c0_i32, %c0_i32_0 : i32, i32
  }
  func.func @transform_7(%arg0: i32) -> (i32, i32) {
    %c0_i32 = arith.constant 0 : i32
    %c0_i32_0 = arith.constant 0 : i32
    return %arg0, %c0_i32 : i32, i32
  }
}

</mosaic_0001>

<bundles_post_ra>
// kernel: tpu_custom_call.1
= control target key start
LH: loop header
LB: loop body
LE: loop exit
PB: predicated region body
PF: predicated region fallthrough
CT: control target
= control target key end

     0   :  { %vm39_vm0 = vcmask 261120   ;;  %vm138_vm1 = vcmask 523264   ;;  %vm314_vm2 = vcmask 23552   ;;  %s514_s1 = inlined_call_operand.vmem [shape: f32[32,64], index: 1, kind: input, shape index: {}]   ;;  %s515_s0 = inlined_call_operand.vmem [shape: f32[16,32], index: 0, kind: input, shape index: {}]   ;;  %s516_s3 = inlined_call_operand.vmem [shape: f32[64,32], index: 3, kind: input, shape index: {}]   ;;  %s517_s2 = inlined_call_operand.vmem [shape: f32[1,64], index: 2, kind: input, shape index: {}]   ;;  %s518_s5 = inlined_call_operand.vmem [shape: f32[32,3], index: 5, kind: input, shape index: {}]   ;;  %s519_s4 = inlined_call_operand.vmem [shape: f32[1,32], index: 4, kind: input, shape index: {}]   ;;  %s520_s6 = inlined_call_operand.vmem [shape: f32[1,3], index: 6, kind: input, shape index: {}]   ;;  %s521_s7 = inlined_call_operand.vmem [shape: f32[16,3], index: 7, kind: output, shape index: {}]  }
   0x1   :  { %v31_v0 = vld [vmem:[%s514_s1 + $0x18] sm:$0xff]  ;;  %v30_v1 = vld [vmem:[%s514_s1 + $0x10] sm:$0xff]  ;;  %v26_v2 = vld [vmem:[%s515_s0] sm:$0xff] }
   0x2   :  { %352 = vmatprep.subr.mxu0 %v31_v0  ;;  %v29_v3 = vld [vmem:[%s514_s1 + $0x8] sm:$0xff]  ;;  %360 = vmatprep.mubr.msk.f32.mxu0 %vm39_vm0, %v26_v2  ;;  %v28_v4 = vld [vmem:[%s514_s1] sm:$0xff]  ;;  %v130_v6 = vld [vmem:[%s516_s3 + $0x38] sm:$0xff] }
   0x3   :  { %353 = vmatpush3.msra.mxu0 %v31_v0  ;;  %v27_v5 = vld [vmem:[%s515_s0 + $0x8] sm:$0xff]  ;;  %363 = vmatprep.subr.mxu1 %v130_v6  ;;  %v129_v7 = vld [vmem:[%s516_s3 + $0x30] sm:$0xff]  ;;  %v127_v9 = vld [vmem:[%s516_s3 + $0x20] sm:$0xff] }
   0x4   :  { %354 = vmatprep.subr.mxu0 %v30_v1  ;;  %364 = vmatpush3.msra.mxu1 %v130_v6  ;;  %v128_v8 = vld [vmem:[%s516_s3 + $0x28] sm:$0xff]  ;;  %v126_v10 = vld [vmem:[%s516_s3 + $0x18] sm:$0xff]  ;;  %v125_v11 = vld [vmem:[%s516_s3 + $0x10] sm:$0xff] }
   0x5   :  { %355 = vmatpush3.msra.mxu0 %v30_v1  ;;  %365 = vmatprep.subr.mxu1 %v129_v7  ;;  %v124_v12 = vld [vmem:[%s516_s3 + $0x8] sm:$0xff]  ;;  %v123_v13 = vld [vmem:[%s516_s3] sm:$0xff]  ;;  %v225_v21 = vld [vmem:[%s518_s5 + $0x18] sm:$0xff] }
   0x6   :  { %356 = vmatprep.subr.mxu0 %v29_v3  ;;  %366 = vmatpush3.msra.mxu1 %v129_v7  ;;  %v321_v14 = vld [vmem:[%s517_s2] ss:$0 sm:$0xff]  ;;  %v224_v22 = vld [vmem:[%s518_s5 + $0x10] sm:$0xff]  ;;  %v223_v23 = vld [vmem:[%s518_s5 + $0x8] sm:$0xff] }
   0x7   :  { %357 = vmatpush3.msra.mxu0 %v29_v3  ;;  %367 = vmatprep.subr.mxu1 %v128_v8  ;;  %v222_v24 = vld [vmem:[%s518_s5] sm:$0xff] }
   0x8   :  { %358 = vmatprep.subr.mxu0 %v28_v4  ;;  %368 = vmatpush3.msra.mxu1 %v128_v8  ;;  %v324_v25 = vld [vmem:[%s519_s4] ss:$0 sm:$0xff] }
   0x9   :  { %359 = vmatpush3.msra.mxu0 %v28_v4  ;;  %369 = vmatprep.subr.mxu1 %v127_v9  ;;  %v327_v32 = vld [vmem:[%s520_s6] ss:$0 sm:$0xff] }
   0xa   :  { %361 = vmatmul.mubr.msk.f32.vlgmr.msra.gmra.mxu0 %vm39_vm0, %v27_v5  ;;  %370 = vmatpush3.msra.mxu1 %v127_v9 }
   0xb   :  { %371 = vmatprep.subr.mxu1 %v126_v10  ;;  %382 = vmatprep.subr.mxu0 %v225_v21 }
   0xc   :  { %372 = vmatpush3.msra.mxu1 %v126_v10  ;;  %383 = vmatpush3.msra.mxu0 %v225_v21 }
   0xd   :  { %373 = vmatprep.subr.mxu1 %v125_v11  ;;  %384 = vmatprep.subr.mxu0 %v224_v22 }
   0xe   :  { %374 = vmatpush3.msra.mxu1 %v125_v11  ;;  %385 = vmatpush3.msra.mxu0 %v224_v22 }
   0xf   :  { %375 = vmatprep.subr.mxu1 %v124_v12  ;;  %386 = vmatprep.subr.mxu0 %v223_v23 }
  0x10   :  { %376 = vmatpush3.msra.mxu1 %v124_v12  ;;  %387 = vmatpush3.msra.mxu0 %v223_v23 }
  0x11   :  { %377 = vmatprep.subr.mxu1 %v123_v13  ;;  %388 = vmatprep.subr.mxu0 %v222_v24 }
  0x12   :  { %378 = vmatpush3.msra.mxu1 %v123_v13  ;;  %389 = vmatpush3.msra.mxu0 %v222_v24 }
  0xca   :  { %v362_v15 = vpop.f32.mrf.mxu0 }
  0xcb   :  { %v118_v16 = vadd.f32 %v362_v15, %v321_v14 }
  0xcc   :  { %v112_v17 = vpop.f32.mrf.mxu0 }
  0xcd   :  { %v113_v18 = vadd.f32 %v321_v14, %v112_v17 }
  0xcf   :  { %393 = vtanh.f32 %v113_v18 }
  0xd0   :  { %395 = vtanh.f32 %v118_v16 }
  0xdc   :  { %v394_v19 = vpop.eup %393 }
  0xdd   :  { %v396_v20 = vpop.eup %395  ;;  %379 = vmatprep.mubr.msk.f32.mxu1 %vm138_vm1, %v394_v19 }
  0xde   :  { %380 = vmatmul.mubr.msk.f32.vlgmr.msra.gmra.mxu1 %vm138_vm1, %v396_v20 }
 0x19e   :  { %v381_v26 = vpop.f32.mrf.mxu1 }
 0x19f   :  { %v217_v27 = vadd.f32 %v381_v26, %v324_v25 }
 0x1a0   :  { %v211_v28 = vpop.f32.mrf.mxu1 }
 0x1a1   :  { %v212_v29 = vadd.f32 %v324_v25, %v211_v28 }
 0x1a3   :  { %397 = vtanh.f32 %v212_v29 }
 0x1a4   :  { %399 = vtanh.f32 %v217_v27 }
 0x1b0   :  { %v398_v30 = vpop.eup %397 }
 0x1b1   :  { %v400_v31 = vpop.eup %399  ;;  %390 = vmatprep.mubr.msk.f32.mxu0 %vm39_vm0, %v398_v30 }
 0x1b2   :  { %391 = vmatmul.mubr.msk.f32.vlgmr.msra.gmra.mxu0 %vm39_vm0, %v400_v31 }
 0x272   :  { %v392_v33 = vpop.f32.mrf.mxu0 }
 0x273   :  { %v311_v34 = vadd.f32 %v392_v33, %v327_v32 }
 0x274   :  { %v305_v35 = vpop.f32.mrf.mxu0 }
 0x275   :  { %316 = vst.msk [vmem:[%s521_s7 + $0x8] sm:$0xff] %vm314_vm2, %v311_v34  ;;  %v306_v36 = vadd.f32 %v327_v32, %v305_v35 }
 0x277   :  { %315 = vst.msk [vmem:[%s521_s7] sm:$0xff] %vm314_vm2, %v306_v36 }

</bundles_post_ra>
